<compile_context>
chip_gen: v7x
topology: tpu7x:2x2x1
jax: 0.10.0
libtpu: 0.0.40
codegen_flags: <defaults>
</compile_context>

<pallas_src>
import jax
import jax.numpy as jnp
from jax.experimental import pallas as pl
from jax.experimental.pallas import tpu as pltpu


def self_attention_kernel(x_ref, m_ref, w_ref, b_ref, o_ref):
    # x_ref : (TB, S, D)  input rows, native dtype (f32 or bf16)     [VMEM]
    # m_ref : (TB, S)     0/1 mask, native integer dtype             [VMEM]
    # w_ref : (1, D)      scorer weight row (resident)               [VMEM]
    # b_ref : (1, 1)      scorer bias                                [SMEM]
    # o_ref : (TB, D)     pooled context rows                        [VMEM]
    x = x_ref[...]                                   # native dtype; no f32 tile copy
    w = w_ref[...]                                   # (1, D), same dtype as x
    b = b_ref[0, 0]                                  # f32 scalar

    # scorer Linear(D, 1): per-token dot(x, w) as a VPU multiply + lane (D)
    # reduce, accumulated in f32.  Kept off the MXU on purpose: the context
    # contraction below uses the MXU (review item 6: never both halves on the
    # same unit).
    scores = jnp.sum((x * w).astype(jnp.float32), axis=-1) + b        # (TB, S) f32

    # masked_fill((1 - mask).bool(), -inf).  Fully-masked rows produce NaN,
    # matching the PyTorch/JAX reference behavior.
    scores = jnp.where(m_ref[...] != 0, scores, jnp.float32(-jnp.inf))

    # numerically stable softmax over the sequence axis (all f32)
    s_max = jnp.max(scores, axis=-1, keepdims=True)                   # (TB, 1)
    e = jnp.exp(scores - s_max)                                       # (TB, S)
    probs = e / jnp.sum(e, axis=-1, keepdims=True)                    # (TB, S)

    # context = sum_s probs * x : contract over S on the MXU, keeping the
    # accumulator at (TB, D) -- no second (TB, S, D) temporary is materialized.
    ctx = jnp.einsum("tqs,tsd->tqd", probs[:, None, :].astype(x.dtype), x,
                     preferred_element_type=jnp.float32)              # (TB, 1, D)
    o_ref[...] = ctx[:, 0, :].astype(o_ref.dtype)


def _choose_block_batch(B, S, D, x_itemsize, mask_itemsize, budget_bytes):
    """Pick the batch tile TB and report the per-row VMEM footprint.

    Accounts for everything that is double-buffered (x, mask, out) plus an f32
    working-set factor for sub-32-bit x; caps TB to the VMEM budget; and caps
    TB further so the grid has >= 2 steps (>= 4 when B is large enough) for
    v7x megacore sharding and DMA pipelining.  TB is a multiple of 8 (sublane
    legal) except for tiny batches where TB == B.
    """
    per_row = (2 * S * D * x_itemsize      # x tile, double-buffered
               + 2 * S * mask_itemsize     # mask tile, double-buffered
               + 2 * D * x_itemsize        # out tile, double-buffered
               + 6 * S * 4)                # f32 scores / exp / probs working set
    if x_itemsize < 4:
        per_row += S * D * 4               # f32 upcast working factor (bf16/int8 x)

    if B <= 8:
        return B, per_row                  # tiny batch: single full block, grid=(1,)

    tb = min(B, max(1, budget_bytes // per_row))
    tb = max(8, (tb // 8) * 8)             # sublane-legal batch tile

    # Keep >= 2 grid steps (>= 4 when possible): both v7x TCs busy, pipeline primed.
    if B // 4 >= 8:
        tb = min(tb, (B // 4 // 8) * 8)
    elif B // 2 >= 8:
        tb = min(tb, (B // 2 // 8) * 8)
    return tb, per_row


def self_attention(x, mask, weight, bias):
    """x: (B,S,D) f32/bf16, mask: (B,S) 0/1 (any int dtype), weight: (1,D), bias: (1,) -> (B,D)."""
    B, S, D = x.shape
    mask2 = mask.reshape(B, S)                       # native dtype: no astype pass
    w_row = weight.reshape(1, D).astype(x.dtype)     # tiny, resident in VMEM
    b2 = bias.reshape(1, 1).astype(jnp.float32)      # scalar, lives in SMEM

    # Generation-aware VMEM ceiling (128 MiB on v5e/v6e, 64 MiB per TC on v7x).
    try:
        vmem_cap = int(pltpu.get_tpu_info().vmem_capacity_bytes)
    except Exception:
        vmem_cap = 64 * 1024 * 1024                  # conservative fallback (v7x)
    if vmem_cap <= 0:
        vmem_cap = 64 * 1024 * 1024
    vmem_limit = (vmem_cap * 3) // 4                 # ~96 MiB v5e/v6e, ~48 MiB v7x
    budget = vmem_limit - 4 * 1024 * 1024            # compiler-internal scratch reserve

    tb, per_row = _choose_block_batch(
        B, S, D,
        jnp.dtype(x.dtype).itemsize, jnp.dtype(mask2.dtype).itemsize, budget)
    # Never let the limit sit below the actual double-buffered footprint.
    vmem_limit = min((vmem_cap * 9) // 10,
                     max(vmem_limit, tb * per_row + 8 * 1024 * 1024))

    grid = (pl.cdiv(B, tb),)

    out = pl.pallas_call(
        self_attention_kernel,
        out_shape=jax.ShapeDtypeStruct((B, D), x.dtype),
        grid_spec=pltpu.PrefetchScalarGridSpec(
            num_scalar_prefetch=0,
            grid=grid,
            in_specs=[
                pl.BlockSpec((tb, S, D), lambda i: (i, 0, 0)),       # input rows
                pl.BlockSpec((tb, S), lambda i: (i, 0)),             # mask rows
                pl.BlockSpec((1, D), lambda i: (0, 0)),              # scorer weight (resident)
                pl.BlockSpec(memory_space=pltpu.MemorySpace.SMEM),   # scorer bias scalar
            ],
            out_specs=pl.BlockSpec((tb, D), lambda i: (i, 0)),
        ),
        compiler_params=pltpu.CompilerParams(
            dimension_semantics=("parallel",),
            vmem_limit_bytes=int(vmem_limit),
        ),
    )(x, mask2, w_row, b2)
    return out


def self_attention_ref(x, mask, weight, bias):
    """Plain-JAX reference mirroring the PyTorch forward."""
    scores = jnp.einsum("bsd,od->bs", x, weight) + bias[0]           # (B, S)
    scores = jnp.where(mask > 0, scores, -jnp.inf)
    probs = jax.nn.softmax(scores, axis=1)                           # (B, S)
    return jnp.einsum("bs,bsd->bd", probs, x)                        # (B, D)


if __name__ == "__main__":
    B, S, D = 16, 8, 32
    key = jax.random.PRNGKey(0)
    kx, kw, kb = jax.random.split(key, 3)

    x = jax.random.normal(kx, (B, S, D), dtype=jnp.float32)

    # deterministic 0/1 mask in its native integer dtype (no wrapper-side cast):
    # row b keeps the first S - (b % 4) positions valid (always >= 5 valid).
    lengths = (S - (jnp.arange(B) % 4)).astype(jnp.int32)
    mask = (jnp.arange(S)[None, :] < lengths[:, None]).astype(jnp.int32)

    # nn.Linear(d_hid, 1): weight (1, D), bias (1,)
    weight = jax.random.normal(kw, (1, D), dtype=jnp.float32) * (1.0 / jnp.sqrt(D))
    bias = jax.random.normal(kb, (1,), dtype=jnp.float32) * 0.1

    out = jax.block_until_ready(self_attention(x, mask, weight, bias))

    ref = self_attention_ref(x, mask, weight, bias)
    assert out.shape == (B, D)
    assert jnp.allclose(out, ref, atol=1e-5, rtol=1e-5), "mismatch vs reference"
    print("KERNEL_OK")
</pallas_src>

<mosaic_0001>
module attributes {stable_mosaic.version = 11 : i64} {
  func.func @self_attention_kernel(%arg0: i32, %arg1: memref<8x8x32xf32, #tpu.memory_space<vmem>>, %arg2: memref<8x8xi32, #tpu.memory_space<vmem>>, %arg3: memref<1x32xf32, #tpu.memory_space<vmem>>, %arg4: memref<1x1xf32, #tpu.memory_space<smem>>, %arg5: memref<8x32xf32, #tpu.memory_space<vmem>>) attributes {dimension_semantics = [#tpu.dimension_semantics<parallel>], iteration_bounds = array<i64: 2>, scalar_prefetch = 0 : i64, scratch_operands = 0 : i64, tpu.core_type = #tpu.core_type<tc>, window_params = [{transform_indices = @transform_0, window_bounds = array<i64: 8, 8, 32>}, {transform_indices = @transform_1, window_bounds = array<i64: 8, 8>}, {pipeline_mode = #tpu.pipeline_mode<synchronous>, transform_indices = @transform_2, window_bounds = array<i64: 1, 32>}, {transform_indices = @transform_3, window_bounds = array<i64: 1, 1>}, {transform_indices = @transform_4, window_bounds = array<i64: 8, 32>}]} {
    %c0 = arith.constant 0 : index
    %c0_0 = arith.constant 0 : index
    %c0_1 = arith.constant 0 : index
    %0 = vector.load %arg1[%c0, %c0_0, %c0_1] : memref<8x8x32xf32, #tpu.memory_space<vmem>>, vector<8x8x32xf32>
    %c0_2 = arith.constant 0 : index
    %c0_3 = arith.constant 0 : index
    %1 = vector.load %arg3[%c0_2, %c0_3] : memref<1x32xf32, #tpu.memory_space<vmem>>, vector<1x32xf32>
    %c0_4 = arith.constant 0 : index
    %c0_5 = arith.constant 0 : index
    %2 = memref.load %arg4[%c0_4, %c0_5] : memref<1x1xf32, #tpu.memory_space<smem>>
    %3 = vector.shape_cast %1 : vector<1x32xf32> to vector<1x1x32xf32>
    %4 = vector.broadcast %3 : vector<1x1x32xf32> to vector<8x8x32xf32>
    %5 = arith.mulf %0, %4 : vector<8x8x32xf32>
    %cst = arith.constant dense<0.000000e+00> : vector<8x8xf32>
    %6 = vector.multi_reduction <add>, %5, %cst [2] : vector<8x8x32xf32> to vector<8x8xf32>
    %7 = vector.broadcast %2 : f32 to vector<8x8xf32>
    %8 = arith.addf %6, %7 : vector<8x8xf32>
    %c0_6 = arith.constant 0 : index
    %c0_7 = arith.constant 0 : index
    %9 = vector.load %arg2[%c0_6, %c0_7] : memref<8x8xi32, #tpu.memory_space<vmem>>, vector<8x8xi32>
    %c0_i32 = arith.constant 0 : i32
    %10 = vector.broadcast %c0_i32 : i32 to vector<8x8xi32>
    %11 = arith.cmpi ne, %9, %10 : vector<8x8xi32>
    %cst_8 = arith.constant 0xFF800000 : f32
    %12 = vector.broadcast %cst_8 : f32 to vector<8x8xf32>
    %13 = arith.select %11, %8, %12 : vector<8x8xi1>, vector<8x8xf32>
    %cst_9 = arith.constant dense<0xFF800000> : vector<8xf32>
    %14 = vector.multi_reduction <maximumf>, %13, %cst_9 [1] : vector<8x8xf32> to vector<8xf32>
    %15 = vector.shape_cast %14 : vector<8xf32> to vector<8x1xf32>
    %16 = vector.broadcast %15 : vector<8x1xf32> to vector<8x8xf32>
    %17 = arith.subf %13, %16 : vector<8x8xf32>
    %18 = math.exp %17 : vector<8x8xf32>
    %cst_10 = arith.constant dense<0.000000e+00> : vector<8xf32>
    %19 = vector.multi_reduction <add>, %18, %cst_10 [1] : vector<8x8xf32> to vector<8xf32>
    %20 = vector.shape_cast %19 : vector<8xf32> to vector<8x1xf32>
    %21 = vector.broadcast %20 : vector<8x1xf32> to vector<8x8xf32>
    %22 = arith.divf %18, %21 : vector<8x8xf32>
    %23 = vector.shape_cast %22 : vector<8x8xf32> to vector<8x1x8xf32>
    "tpu.trace_start"() <{level = 10 : i32, message = "tqs,tsd->tqd"}> : () -> ()
    %cst_11 = arith.constant dense<0.000000e+00> : vector<8x1x32xf32>
    %24 = tpu.matmul %23, %0, %cst_11 {dimension_numbers = #tpu.dot_dimension_numbers<[2], [1], [1], [2], [0, 0, 0, 1, 1, 2], [0], [0]>} : vector<8x1x8xf32>, vector<8x8x32xf32>, vector<8x1x32xf32> -> vector<8x1x32xf32>
    "tpu.trace_stop"() : () -> ()
    %25 = vector.shape_cast %24 : vector<8x1x32xf32> to vector<8x32xf32>
    %c0_12 = arith.constant 0 : index
    %c0_13 = arith.constant 0 : index
    %26 = vector.load %arg5[%c0_12, %c0_13] : memref<8x32xf32, #tpu.memory_space<vmem>>, vector<8x32xf32>
    tpu.vector_store %arg5[%c0_12, %c0_13], %25 {strides = array<i32>} : memref<8x32xf32, #tpu.memory_space<vmem>>, vector<8x32xf32>,
    return
  }
  func.func @transform_0(%arg0: i32) -> (i32, i32, i32) {
    %c0_i32 = arith.constant 0 : i32
    %c0_i32_0 = arith.constant 0 : i32
    %c0_i32_1 = arith.constant 0 : i32
    return %arg0, %c0_i32, %c0_i32_0 : i32, i32, i32
  }
  func.func @transform_1(%arg0: i32) -> (i32, i32) {
    %c0_i32 = arith.constant 0 : i32
    %c0_i32_0 = arith.constant 0 : i32
    return %arg0, %c0_i32 : i32, i32
  }
  func.func @transform_2(%arg0: i32) -> (i32, i32) {
    %c0_i32 = arith.constant 0 : i32
    %c0_i32_0 = arith.constant 0 : i32
    %c0_i32_1 = arith.constant 0 : i32
    return %c0_i32, %c0_i32_0 : i32, i32
  }
  func.func @transform_3(%arg0: i32) -> (i32, i32) {
    %c0_i32 = arith.constant 0 : i32
    %c0_i32_0 = arith.constant 0 : i32
    %c0_i32_1 = arith.constant 0 : i32
    return %c0_i32, %c0_i32_0 : i32, i32
  }
  func.func @transform_4(%arg0: i32) -> (i32, i32) {
    %c0_i32 = arith.constant 0 : i32
    %c0_i32_0 = arith.constant 0 : i32
    return %arg0, %c0_i32 : i32, i32
  }
}

</mosaic_0001>

<bundles_post_ra>
// kernel: tpu_custom_call.1
= control target key start
LH: loop header
LB: loop body
LE: loop exit
PB: predicated region body
PF: predicated region fallthrough
CT: control target
= control target key end

     0   :  { %s1625_s0 = inlined_call_operand.hbm [shape: f32[16,8,32], index: 0, kind: input, shape index: {}]   ;;  %s1626_s1 = inlined_call_operand.vmem [shape: s32[16,8], index: 1, kind: input, shape index: {}]   ;;  %s1627_s2 = inlined_call_operand.vmem [shape: f32[1,32], index: 2, kind: input, shape index: {}]   ;;  %s1628_s3 = inlined_call_operand.<no memory space> [shape: f32[1,1], index: 3, kind: input, shape index: {}]   ;;  %s1629_s4 = inlined_call_operand.hbm [shape: f32[16,32], index: 4, kind: output, shape index: {}]  }
   0x1   :  { %9 = sst [smem:[#allocation2]] %s1628_s3 }
   0x2   :  { %10 = vsyncpa [#allocation4], 0 }
   0x3   :  { %12 = vsyncpa [#allocation4 + $0x1], 0 }
   0x4   :  { %13 = vsyncpa [#allocation5], 0 }
   0x5   :  { %15 = vsyncpa [#allocation5 + $0x1], 0  ;;  %s1379_s17 = smov 0   ;;  %s1381_s18 = smov 0  }
   0x6   :  { %s1383_s19 = smov 0   ;;  %s1385_s20 = smov 0  }
   0x7 LB: > { %s1400_s3 = sadd.s32 4294967295, %s1342_s20   ;;  %s1111_s21 = sadd.s32 4294967294, %s1342_s20   ;;  %s1342_s20 = sphi %s1385_s20, %s1642_s20   ;;  %s1338_s19 = sphi %s1383_s19, %s1641_s19   ;;  %s1334_s18 = sphi %s1381_s18, %s1640_s18   ;;  %s1330_s17 = sphi %s1379_s17, %s1639_s17  }
   0x8   : > { %s1404_s22 = sadd.s32 1, %s1342_s20   ;;  %s28_s23 = sadd.s32 1, %s1338_s19 }
   0x9   : > { %s25_s24 = ssub.s32 %s1342_s20, %s1404_s22  ;;  %p35_p0 = scmp.ne.s32.totalorder %s1338_s19, %s1334_s18 }
   0xa   : > { %p26_p1 = scmp.eq.s32.totalorder %s25_s24, 0  ;;  %p36_p2 = scmp.eq.s32.totalorder %s1342_s20, 0 }
   0xb   : > { %p41_p3 = scmp.ne.s32.totalorder %s1334_s18, %s1330_s17  ;;  %p42_p4 = scmp.eq.s32.totalorder %s1400_s3, 0 }
   0xc   : > { %s1416_s25 = scalar_select %p26_p1, %s1338_s19, %s28_s23  }
   0xd   : > { %p1418_p5 = por %p36_p2, %p35_p0  ;;  %p1422_p6 = por %p42_p4, %p41_p3 }
   0xe   : > { %p133_p7 = scmp.eq.s32.totalorder %s1400_s3, 1  ;;  %p139_p8 = scmp.eq.s32.totalorder %s1111_s21, 1 }
   0xf   : > { %p1203_p10 = scmp.lt.s32.totalorder %s1342_s20, 2  ;;  %s165_s30 = sand.u32 1, %s1338_s19  }
  0x10   : > { %p1429_p11 = por %p133_p7, %p35_p0  ;;  %p1433_p12 = por %p139_p8, %p41_p3 }
  0x11   : > { %s1134_s5 = sshll.u32 %s1342_s20, 10  ;;  %s1114_s6 = sshll.u32 %s165_s30, 6 }
  0x12   : > { %s1633_s28 = scalar_select %p1429_p11, 1, 0 }
  0x13   : > { %s1634_s29 = scalar_select %p1433_p12, 1, 0 }
  0x14   : > { %s1442_s9 = scalar_lea.hbm %s1625_s0, %s1134_s5  ;;  %s169_s10 = scalar_lea.vmem [#allocation3], %s1114_s6 }
  0x15   : > { %s176_s11 = sshll.u32 %s169_s10, 4  ;;  %p1446_p13 = pnand %p1203_p10, %p1418_p5  ;;  %s1450_s11 = int_to_ptr.vmem [resolvable:$true] %s176_s11 }
  0x16   : > { %s1452_s13 = scalar_lea.sflag [#allocation4], %s165_s30  ;;  %s1246_s14 = scalar_lea.hbm %s1442_s9, 1024 }
  0x17   : > { %p1247_p0 = scmp.ne.s32.totalorder %s1442_s9, %s1246_s14  ;;  %p1248_p1 = pneg %p1446_p13 }
  0x18   : > { %s1251_s21 = scalar_lea.hbm %s1625_s0, 2048  ;;  %p1252_p4 = scmp.lt.u32.totalorder %s1442_s9, %s1625_s0 }
  0x19   : > { %p1249_p2 = pnand %p1248_p1, %p1247_p0  ;;  %p1253_p5 = scmp.lt.u32.totalorder %s1251_s21, %s1246_s14 }
  0x1a   : > { %p1255_p8 = scmp.lt.u32.totalorder %s1246_s14, %s1442_s9 }
  0x1b   : > { %p1250_p3 = pneg %p1249_p2  ;;  %p1254_p7 = por %p1253_p5, %p1252_p4 }
  0x1d   : > { %p1256_p10 = por %p1255_p8, %p1254_p7 }
  0x1f   : > { %p1257_p9 = pnand %p1256_p10, %p1250_p3 }
  0x21   : > { %1260 = shalt.err (!%p1257_p9)
}
  0x22   : > { %s1261_s26 = scalar_lea.vmem %s1450_s11, 1024  ;;  %s1344_s30 = smov [#allocation3]  }
  0x23   : > { %p1262_p0 = scmp.ne.s32.totalorder %s1450_s11, %s1261_s26  ;;  %s1266_s5 = sshll.u32 %s1344_s30, 4  ;;  %s1267_s5 = int_to_ptr.vmem [resolvable:$false] %s1266_s5 }
  0x24   : > { %s1268_s6 = scalar_lea.vmem %s1267_s5, 2048  ;;  %p1269_p11 = scmp.lt.s32.totalorder %s1450_s11, %s1267_s5 }
  0x25   : > { %p1264_p2 = pnand %p1262_p0, %p1248_p1  ;;  %p1270_p4 = scmp.lt.s32.totalorder %s1268_s6, %s1261_s26 }
  0x27   : > { %p1265_p12 = pneg %p1264_p2  ;;  %p1271_p5 = por %p1270_p4, %p1269_p11 }
  0x29   : > { %p1272_p7 = pnand %p1271_p5, %p1265_p12 }
  0x2b   : > { %1275 = shalt.err (!%p1272_p7)
}
  0x2c   : > { %s1345_s7 = smov 128   ;;  %s1346_s8 = smov 8  }
  0x2d   : > { %1198 = dma.hbm_to_vmem [thread:$0]  (!%p1446_p13), %s1442_s9, 1024, %s1450_s11, %s1452_s13, %s1345_s7, %s1345_s7, %s1346_s8  }
  0x2e   : > { %p1117_p9 = scmp.ge.s32.totalorder %s1342_s20, 1  ;;  %p191_p1 = scmp.lt.s32.totalorder %s1342_s20, 3 }
  0x30   : > { %p192_p3 = pnand %p1117_p9, %p191_p1 }
  0x31   : > { %s1483_s10 = sand.u32 (!%p192_p3), 1, %s1334_s18  }
  0x32   : > { %195 = sbr.rel (%p192_p3) target bundleno = 785 (0x311), region = 36  ;;  %s1118_s14 = sshll.u32 (!%p192_p3), %s1483_s10, 6 }
  0x33   : > { %s198_s15 = scalar_lea.sflag (!%p192_p3), [#allocation4], %s1483_s10  ;;  %s201_s16 = scalar_lea.vmem (!%p192_p3), [#allocation3], %s1118_s14 }
  0x39   : > { %1321 = dma.done.wait (%p1422_p6), %s198_s15, 1024  }
  0x3a   : > { %1323 = vsyncadd (%p1422_p6), %s198_s15, 4294966272  ;;  %v1491_v0 = vld [vmem:[%s201_s16] sm:$0xff]  ;;  %vm259_vm0 = vcmask 261120   ;;  %v1496_v2 = vld [vmem:[%s201_s16 + $0x10] sm:$0xff]  ;;  %s244_s27 = sld [smem:[#allocation2]]  ;;  %v303_v25 = vlaneseq  ;;  %p231_p6 = scmp.lt.s32.totalorder %s1400_s3, 1 }
  0x3b   : > { %v1121_v1 = vld [vmem:[%s1627_s2] ss:$0 sm:$0xff]  ;;  %v1500_v5 = vld [vmem:[%s201_s16 + $0x8] sm:$0xff]  ;;  %v1502_v6 = vld [vmem:[%s201_s16 + $0x18] sm:$0xff]  ;;  %vm337_vm1 = vcmask 1041409   ;;  %vm339_vm2 = vcmask 1042434  }
  0x3c   : > { %v251_v3 = vmul.f32 %v1121_v1, %v1491_v0  ;;  %v253_v4 = vmul.f32 %v1121_v1, %v1496_v2  ;;  %v252_v7 = vmul.f32 %v1121_v1, %v1500_v5  ;;  %v254_v8 = vmul.f32 %v1121_v1, %v1502_v6  ;;  %v1506_v9 = vld [vmem:[%s201_s16 + $0x20] sm:$0xff]  ;;  %v1508_v10 = vld [vmem:[%s201_s16 + $0x28] sm:$0xff]  ;;  %v1516_v17 = vld [vmem:[%s201_s16 + $0x30] sm:$0xff]  ;;  %s232_s12 = scalar_select %p231_p6, %s1400_s3, 1 }
  0x3d   : > { %v255_v15 = vmul.f32 %v1121_v1, %v1506_v9  ;;  %v256_v16 = vmul.f32 %v1121_v1, %v1508_v10  ;;  %v1518_v18 = vld [vmem:[%s201_s16 + $0x38] sm:$0xff]  ;;  %v257_v21 = vmul.f32 %v1121_v1, %v1516_v17  ;;  %v304_v26 = vand.u32 127, %v303_v25  ;;  %s1119_s26 = sshll.u32 %s1483_s10, 3  ;;  %s1131_s30 = sshll.u32 %s1400_s3, 7 }
  0x3e   : > { %v260_v11 = vsel %vm259_vm0, %v251_v3, 0.0  ;;  %v266_v12 = vsel %vm259_vm0, %v253_v4, 0.0  ;;  %v263_v13 = vsel %vm259_vm0, %v252_v7, 0.0  ;;  %v269_v14 = vsel %vm259_vm0, %v254_v8, 0.0  ;;  %s1120_s13 = sshll.u32 %s232_s12, 3  ;;  %s229_s5 = scalar_lea.vmem [#allocation6], %s1119_s26 }
  0x3f   : > { %261 = vadd.xlane.f32.xlu0 %v260_v11  ;;  %267 = vadd.xlane.f32.xlu1 %v266_v12  ;;  %v272_v19 = vsel %vm259_vm0, %v255_v15, 0.0  ;;  %v275_v20 = vsel %vm259_vm0, %v256_v16, 0.0  ;;  %v258_v22 = vmul.f32 %v1121_v1, %v1518_v18  ;;  %v278_v23 = vsel %vm259_vm0, %v257_v21, 0.0  ;;  %s234_s24 = scalar_lea.vmem %s1626_s1, %s1120_s13  ;;  %s1029_s6 = sshll.u32 %s229_s5, 4  ;;  %s1581_s6 = int_to_ptr.vmem [resolvable:$true] %s1029_s6 }
  0x40   : > { %v1526_v27 = vshrl.u32 %v303_v25, 7  ;;  %v284_v28 = vstv %s244_s27  ;;  %vm341_vm3 = vcmask 1043459   ;;  %vm343_vm4 = vcmask 1044484   ;;  %v293_v56 = vld [vmem:[%s234_s24] sm:$0xff]  ;;  %s1579_s14 = scalar_lea.hbm %s1629_s4, %s1131_s30  ;;  %s1016_s3 = scalar_lea.sflag [#allocation5], %s1483_s10 }
  0x41   : > { %v281_v24 = vsel %vm259_vm0, %v258_v22, 0.0  ;;  %vm345_vm5 = vcmask 1045509   ;;  %vm347_vm6 = vcmask 1046534   ;;  %vm349_vm7 = vcmask 1047559   ;;  %s1276_s15 = scalar_lea.vmem %s1581_s6, 128  ;;  %p1636_p12 = scmp.ne.s32.totalorder %s1633_s28, 0 }
  0x42   : > { %v307_v31 = vsub.s32 %v304_v26, %v1526_v27  ;;  %vm294_vm8 = vcmp.ne.s32.totalorder %v293_v56, 0  ;;  %vm353_vm9 = vcmask 64512   ;;  %v1347_v11 = vmov 0.0   ;;  %p1277_p11 = scmp.ne.s32.totalorder %s1581_s6, %s1276_s15  ;;  %s1350_s16 = smov [#allocation6]  }
  0x43   : > { %264 = vadd.xlane.f32.xlu0 %v263_v13  ;;  %270 = vadd.xlane.f32.xlu1 %v269_v14  ;;  %vm1348_vm10 = vmmov 0   ;;  %v1349_v13 = vmov 1966171168   ;;  %s1280_s9 = sshll.u32 %s1350_s16, 4  ;;  %s1281_s9 = int_to_ptr.vmem [resolvable:$false] %s1280_s9 }
  0x44   : > { %1151 = vmatprep.subr.mxu0 %v1347_v11  ;;  %1153 = vmatprep.mubr.msk.f32.mxu0 %vm1348_vm10, %v1347_v11  ;;  %v368_v14 = vunpack.c.l.s4 %v1349_v13  ;;  %p1278_p13 = pnand %p1277_p11, %p1636_p12  ;;  %s1282_s11 = scalar_lea.vmem %s1281_s9, 256 }
  0x45   : > { %1152 = vmatpush3.msra.mxu0 %v1491_v0  ;;  %1156 = vmatprep.subr.mxu1 %v1347_v11  ;;  %p1283_p10 = scmp.lt.s32.totalorder %s1581_s6, %s1281_s9  ;;  %p1284_p0 = scmp.lt.s32.totalorder %s1282_s11, %s1276_s15 }
  0x46   : > { %1157 = vmatpush3.msra.mxu1 %v1500_v5  ;;  %1161 = vmatprep.subr.mxu0 %v1347_v11  ;;  %v369_v15 = vunpack.c.0.s8 %v368_v14  ;;  %p1279_p8 = pneg %p1278_p13 }
  0x47   : > { %273 = vadd.xlane.f32.xlu0 %v272_v19  ;;  %276 = vadd.xlane.f32.xlu1 %v275_v20  ;;  %p1285_p2 = por %p1284_p0, %p1283_p10 }
  0x48   : > { %1158 = vmatprep.mubr.msk.f32.mxu1 %vm1348_vm10, %v1347_v11  ;;  %1166 = vmatprep.subr.mxu1 %v1347_v11  ;;  %v372_v16 = vsub.s32 %v369_v15, %v1526_v27 }
  0x49   : > { %p1286_p4 = pnand %p1285_p2, %p1279_p8 }
  0x4b   : > { %279 = vadd.xlane.f32.xlu0 %v278_v23  ;;  %282 = vadd.xlane.f32.xlu1 %v281_v24 }
  0xcc   : > { %v262_v29 = vpop.xlane.xlu0 %261  ;;  %v268_v30 = vpop.xlane.xlu1 %267 }
  0xcd   : > { %v285_v32 = vadd.f32 %v284_v28, %v262_v29  ;;  %v287_v33 = vadd.f32 %v284_v28, %v268_v30 }
  0xcf   : > { %v308_v38 = vrot.slane %v285_v32, %v307_v31  ;;  %v316_v41 = vrot.slane %v287_v33, %v307_v31 }
  0xd0   : > { %v265_v34 = vpop.xlane.xlu0 %264  ;;  %v271_v35 = vpop.xlane.xlu1 %270 }
  0xd1   : > { %v286_v36 = vadd.f32 %v284_v28, %v265_v34  ;;  %v288_v37 = vadd.f32 %v284_v28, %v271_v35 }
  0xd3   : > { %v312_v39 = vrot.slane %v286_v36, %v307_v31  ;;  %v320_v40 = vrot.slane %v288_v37, %v307_v31 }
  0xd4   : > { %v274_v42 = vpop.xlane.xlu0 %273  ;;  %v277_v43 = vpop.xlane.xlu1 %276 }
  0xd5   : > { %v338_v44 = vsel %vm337_vm1, %v312_v39, %v308_v38  ;;  %v289_v45 = vadd.f32 %v284_v28, %v274_v42  ;;  %v290_v46 = vadd.f32 %v284_v28, %v277_v43 }
  0xd6   : > { %v340_v47 = vsel %vm339_vm2, %v316_v41, %v338_v44 }
  0xd7   : > { %v342_v48 = vsel %vm341_vm3, %v320_v40, %v340_v47  ;;  %v324_v49 = vrot.slane %v289_v45, %v307_v31  ;;  %v328_v50 = vrot.slane %v290_v46, %v307_v31 }
  0xd8   : > { %v280_v51 = vpop.xlane.xlu0 %279  ;;  %v283_v52 = vpop.xlane.xlu1 %282 }
  0xd9   : > { %v344_v53 = vsel %vm343_vm4, %v324_v49, %v342_v48  ;;  %v291_v54 = vadd.f32 %v284_v28, %v280_v51  ;;  %v292_v55 = vadd.f32 %v284_v28, %v283_v52 }
  0xda   : > { %v346_v59 = vsel %vm345_vm5, %v328_v50, %v344_v53 }
  0xdb   : > { %v332_v57 = vrot.slane %v291_v54, %v307_v31  ;;  %v336_v58 = vrot.slane %v292_v55, %v307_v31 }
  0xdd   : > { %v348_v60 = vsel %vm347_vm6, %v332_v57, %v346_v59 }
  0xde   : > { %v350_v61 = vsel %vm349_vm7, %v336_v58, %v348_v60 }
  0xdf   : > { %v352_v62 = vsel %vm294_vm8, %v350_v61, -inf }
  0xe0   : > { %v354_v63 = vsel %vm353_vm9, %v352_v62, -inf }
  0xe1   : > { %355 = vmax.xlane.f32.xlu0 %v354_v63 }
 0x16e   : > { %v356_v1 = vpop.xlane.xlu0 %355 }
 0x16f   : > { %v357_v3 = vsub.f32 %v352_v62, %v356_v1 }
 0x171   : > { %v358_v4 = vmul.f32 1.442695, %v357_v3 }
 0x173   : > { %1242 = vpow2.f32 %v358_v4 }
 0x17d   : > { %v1243_v7 = vpop.eup %1242 }
 0x17e   : > { %v360_v8 = vsel %vm353_vm9, %v1243_v7, 0.0 }
 0x17f   : > { %361 = vadd.xlane.f32.xlu1 %v360_v8 }
 0x20c   : > { %v362_v12 = vpop.xlane.xlu1 %361 }
 0x20d   : > { %1244 = vrcp.f32 %v362_v12 }
 0x217   : > { %v1245_v19 = vpop.eup %1244 }
 0x218   : > { %v364_v20 = vmul.f32 %v1245_v19, %v1243_v7 }
 0x21a   : > { %v366_v21 = vcombine.high %v364_v20, %v364_v20  ;;  %v373_v22 = vrot.slane %v364_v20, %v372_v16 }
 0x21c   : > { %v389_v23 = vrot.slane %v373_v22, %v372_v16  ;;  %v381_v0 = vcombine.high %v373_v22, %v373_v22  ;;  %v380_v24 = vrot.slane %v366_v21, %v372_v16 }
 0x21e   : > { %1154 = vmatmul.mubr.msk.f32.vlgmr.msra.gmra.mrb[0].mxu0 %vm353_vm9, %v389_v23  ;;  %v403_v5 = vrot.slane %v381_v0, %v372_v16  ;;  %v411_v25 = vcombine.high %v389_v23, %v389_v23  ;;  %v382_v27 = vcombine.high %v380_v24, %v380_v24 }
 0x21f   : > { %1162 = vmatpush3.msra.mxu0 %v1496_v2  ;;  %1163 = vmatprep.mubr.msk.f32.mxu0 %vm1348_vm10, %v1347_v11  ;;  %v396_v2 = vrot.slane %v380_v24, %v372_v16 }
 0x220   : > { %1159 = vmatmul.mubr.msk.f32.vlgmr.msra.gmra.mrb[0].mxu1 %vm353_vm9, %v403_v5  ;;  %1171 = vmatprep.subr.mxu0 %v1347_v11  ;;  %v413_v26 = vcombine.high %v403_v5, %v403_v5 }
 0x221   : > { %1167 = vmatpush3.msra.mxu1 %v1502_v6  ;;  %1168 = vmatprep.mubr.msk.f32.mxu1 %vm1348_vm10, %v1347_v11  ;;  %v410_v6 = vrot.slane %v382_v27, %v372_v16 }
 0x222   : > { %1164 = vmatmul.mubr.msk.f32.vlgmr.msra.gmra.mrb[2].mxu0 %vm353_vm9, %v411_v25  ;;  %1176 = vmatprep.subr.mxu1 %v1347_v11 }
 0x223   : > { %1172 = vmatpush3.msra.mxu0 %v1506_v9  ;;  %1173 = vmatprep.mubr.msk.f32.mxu0 %vm1348_vm10, %v1347_v11  ;;  %v412_v9 = vcombine.high %v396_v2, %v396_v2 }
 0x224   : > { %1169 = vmatmul.mubr.msk.f32.vlgmr.msra.gmra.mrb[2].mxu1 %vm353_vm9, %v413_v26  ;;  %1181 = vmatprep.subr.mxu0 %v1347_v11 }
 0x225   : > { %1177 = vmatpush3.msra.mxu1 %v1508_v10  ;;  %1178 = vmatprep.mubr.msk.f32.mxu1 %vm1348_vm10, %v1347_v11  ;;  %v414_v10 = vcombine.high %v410_v6, %v410_v6 }
 0x226   : > { %1174 = vmatmul.mubr.msk.f32.vlgmr.msra.gmra.mrb[4].mxu0 %vm353_vm9, %v396_v2  ;;  %1186 = vmatprep.subr.mxu1 %v1347_v11 }
 0x227   : > { %1182 = vmatpush3.msra.mxu0 %v1516_v17  ;;  %1183 = vmatprep.mubr.msk.f32.mxu0 %vm1348_vm10, %v1347_v11 }
 0x228   : > { %1179 = vmatmul.mubr.msk.f32.vlgmr.msra.gmra.mrb[4].mxu1 %vm353_vm9, %v410_v6 }
 0x229   : > { %1187 = vmatpush3.msra.mxu1 %v1518_v18  ;;  %1188 = vmatprep.mubr.msk.f32.mxu1 %vm1348_vm10, %v1347_v11 }
 0x22a   : > { %1184 = vmatmul.mubr.msk.f32.vlgmr.msra.gmra.mrb[6].mxu0 %vm353_vm9, %v412_v9 }
 0x22c   : > { %1189 = vmatmul.mubr.msk.f32.vlgmr.msra.gmra.mrb[6].mxu1 %vm353_vm9, %v414_v10 }
 0x2f1   : > { %v483_v28 = vpop.f32.mrb[0].mxu0 }
 0x2f2   : > { %v1155_v29 = vpop.f32.mrb[1].mxu0 }
 0x2f3   : > { %v555_v30 = vpop.f32.mrb[0].mxu1 }
 0x2f4   : > { %v999_v31 = vrot.slane %v555_v30, 7  ;;  %v1160_v17 = vpop.f32.mrb[1].mxu1 }
 0x2f5   : > { %v627_v32 = vpop.f32.mrb[2].mxu0 }
 0x2f6   : > { %v1000_v33 = vsel %vm337_vm1, %v999_v31, %v483_v28  ;;  %v1001_v34 = vrot.slane %v627_v32, 6  ;;  %v1165_v35 = vpop.f32.mrb[3].mxu0 }
 0x2f7   : > { %v699_v36 = vpop.f32.mrb[2].mxu1 }
 0x2f8   : > { %v1002_v18 = vsel %vm339_vm2, %v1001_v34, %v1000_v33  ;;  %v1003_v37 = vrot.slane %v699_v36, 5  ;;  %v1170_v38 = vpop.f32.mrb[3].mxu1 }
 0x2f9   : > { %v771_v39 = vpop.f32.mrb[4].mxu0 }
 0x2fa   : > { %v1004_v40 = vsel %vm341_vm3, %v1003_v37, %v1002_v18  ;;  %v1005_v41 = vrot.slane %v771_v39, 4  ;;  %v1175_v42 = vpop.f32.mrb[5].mxu0 }
 0x2fb   : > { %v843_v43 = vpop.f32.mrb[4].mxu1 }
 0x2fc   : > { %v1006_v44 = vsel %vm343_vm4, %v1005_v41, %v1004_v40  ;;  %v1007_v45 = vrot.slane %v843_v43, 3  ;;  %v1180_v46 = vpop.f32.mrb[5].mxu1 }
 0x2fd   : > { %v915_v47 = vpop.f32.mrb[6].mxu0 }
 0x2fe   : > { %v1008_v48 = vsel %vm345_vm5, %v1007_v45, %v1006_v44  ;;  %v1009_v49 = vrot.slane %v915_v47, 2  ;;  %v1185_v50 = vpop.f32.mrb[7].mxu0 }
 0x2ff   : > { %v987_v51 = vpop.f32.mrb[6].mxu1 }
 0x300   : > { %v1010_v52 = vsel %vm347_vm6, %v1009_v49, %v1008_v48  ;;  %v1011_v53 = vrot.slane %v987_v51, 1  ;;  %v1190_v54 = vpop.f32.mrb[7].mxu1 }
 0x302   : > { %v1012_v55 = vsel %vm349_vm7, %v1011_v53, %v1010_v52 }
 0x303   : > { %1014 = vst.msk [vmem:[%s229_s5] sm:$0xff] %vm259_vm0, %v1012_v55 }
 0x304   : > { %1289 = shalt.err (!%p1286_p4)
}
 0x305   : > { %s1290_s10 = scalar_lea.hbm %s1579_s14, 128  ;;  %s1294_s13 = scalar_lea.hbm %s1629_s4, 256 }
 0x306   : > { %p1291_p5 = scmp.ne.s32.totalorder %s1579_s14, %s1290_s10  ;;  %p1295_p1 = scmp.lt.u32.totalorder %s1579_s14, %s1629_s4 }
 0x307   : > { %p1296_p3 = scmp.lt.u32.totalorder %s1294_s13, %s1290_s10  ;;  %p1298_p11 = scmp.lt.u32.totalorder %s1290_s10, %s1579_s14 }
 0x308   : > { %p1292_p7 = pnand %p1291_p5, %p1636_p12 }
 0x309   : > { %p1297_p6 = por %p1296_p3, %p1295_p1 }
 0x30a   : > { %p1293_p9 = pneg %p1292_p7 }
 0x30b   : > { %p1299_p13 = por %p1298_p11, %p1297_p6 }
 0x30d   : > { %p1300_p8 = pnand %p1299_p13, %p1293_p9 }
 0x30f   : > { %1303 = shalt.err (!%p1300_p8)
}
 0x310   : > { %1193 = dma.vmem_to_hbm [thread:$0]  (%p1636_p12), %s1581_s6, 128, %s1579_s14, %s1016_s3  }
 0x311 PF: > { %s1041_s24 = sand.u32 1, %s1330_s17   ;;  %p1637_p10 = scmp.ne.s32.totalorder %s1634_s29, 0 }
 0x312   : > { %p1638_p0 = scmp.ge.s32.totalorder %s1342_s20, 2  ;;  %s1042_s26 = scalar_lea.sflag [#allocation5], %s1041_s24 }
 0x314   : > { %p1200_p2 = pnand %p1638_p0, %p1637_p10 }
 0x316   : > { %1325 = dma.done.wait (!%p1200_p2), %s1042_s26, 128  }
 0x317   : > { %1327 = vsyncadd (!%p1200_p2), %s1042_s26, 4294967168  ;;  %p18_p4 = scmp.ge.s32.totalorder %s1404_s22, 4   ;;  %s1639_s17 = smov %s1334_s18 }
 0x318   : > { %s1640_s18 = smov %s1338_s19  ;;  %s1641_s19 = smov %s1416_s25 }
 0x319   : > { %s1642_s20 = smov %s1404_s22  ;;  %20 = sbr.rel (!%p18_p4) target bundleno = 7 (0x7), region = 84 }
 0x320   :  { %1047 = vsyncpa [#allocation4], 1 }
 0x321   :  { %1049 = vsyncpa [#allocation4 + $0x1], 1 }
 0x322   :  { %1050 = vsyncpa [#allocation5], 1 }
 0x323   :  { %1052 = vsyncpa [#allocation5 + $0x1], 1 }

</bundles_post_ra>
